<compile_context>
chip_gen: v5e
topology: v5e:2x2
jax: 0.10.0
libtpu: 0.0.40
codegen_flags: <defaults>
</compile_context>

<pallas_src>
import functools
import math

import jax
import jax.numpy as jnp
from jax import lax
from jax.experimental import pallas as pl
from jax.experimental.pallas import tpu as pltpu


def _round_up(x, m):
    return ((x + m - 1) // m) * m


def _mlp_kernel(x_ref, w1_ref, b1_ref, w2_ref, b2_ref, w3_ref, b3_ref, o_ref):
    # x tile arrives as (tb, 16); contract its feature axis (dim 1) against W1's
    # feature axis (dim 1): (200, 16) x (tb, 16)^T -> (200, tb).  Batch stays on
    # the lane axis for the rest of the kernel.
    h1 = lax.dot_general(
        w1_ref[...], x_ref[...],
        dimension_numbers=(((1,), (1,)), ((), ())),
        preferred_element_type=jnp.float32)                                 # (200, tb)
    h1 = jnp.maximum(h1 + b1_ref[...], 0.0)
    h2 = jnp.dot(w2_ref[...], h1, preferred_element_type=jnp.float32)      # (80, tb)
    h2 = jnp.maximum(h2 + b2_ref[...], 0.0)
    # Final 80 -> 1 layer on VPU/XLU slots (they have slack): broadcast-mul then
    # cross-sublane reduce; result stays lane-dense as (1, tb).
    out = jnp.sum(h2 * w3_ref[...], axis=0, keepdims=True) + b3_ref[0]     # (1, tb)
    o_ref[...] = out.astype(o_ref.dtype)


@functools.partial(jax.jit, static_argnames=("block_b",))
def neural_model_forward(x, params, block_b=1024):
    """x: (B, 16) float32. Returns (B, 1) float32 (matches torch forward)."""
    w1, b1, w2, b2, w3, b3 = params
    B, d_in = x.shape
    assert d_in == 16

    # Batch tile: at least one full vreg lane width (128), at most block_b, and
    # ~B/2 (rounded up to 128) so batches > 128 produce >= 2 "parallel" grid
    # steps (uses both TensorCores on v7x); bigger tiles amortize per-step
    # overhead on single-TC v5e/v6e.  Total VMEM footprint stays < 2 MiB.
    tb = max(128, min(block_b, _round_up(-(-B // 2), 128)))
    n_blocks = -(-B // tb)
    b_pad = n_blocks * tb

    flops = 2 * b_pad * (16 * 200 + 200 * 80 + 80)
    bytes_accessed = 4 * (B * 16 + 200 * 16 + 200 + 80 * 200 + 80 + 80 + 1 + B)

    out = pl.pallas_call(
        _mlp_kernel,
        out_shape=jax.ShapeDtypeStruct((1, b_pad), jnp.float32),
        grid_spec=pltpu.PrefetchScalarGridSpec(
            num_scalar_prefetch=0,
            grid=(n_blocks,),
            in_specs=[
                pl.BlockSpec((tb, 16), lambda i: (i, 0)),            # x tile (ragged tail clipped by Pallas)
                pl.BlockSpec((200, 16), lambda i: (0, 0)),           # W1 (torch layout), resident
                pl.BlockSpec((200, 1), lambda i: (0, 0)),            # b1 column
                pl.BlockSpec((80, 200), lambda i: (0, 0)),           # W2
                pl.BlockSpec((80, 1), lambda i: (0, 0)),             # b2 column
                pl.BlockSpec((80, 1), lambda i: (0, 0)),             # w3 column
                pl.BlockSpec(memory_space=pltpu.MemorySpace.SMEM),   # b3 scalar
            ],
            out_specs=pl.BlockSpec((1, tb), lambda i: (0, i)),       # lane-dense (1, tb) stores
        ),
        compiler_params=pltpu.CompilerParams(
            dimension_semantics=("parallel",)),
        cost_estimate=pl.CostEstimate(
            flops=flops, transcendentals=0, bytes_accessed=bytes_accessed),
    )(x, w1, b1, w2, b2, w3, b3)

    # Kernel output is lane-major (1, b_pad); drop padded lanes and present the
    # torch-shaped (B, 1) column exactly once, at the very end.
    return out[0, :B].reshape(B, 1)


def init_params(key):
    """Deterministic init mimicking torch.nn.Linear (U[-1/sqrt(fan_in), 1/sqrt(fan_in)]).
    Weights kept in torch (out_features, in_features) layout; biases as columns;
    the final layer stored as an (80, 1) column + (1,) scalar for the VPU path."""
    k = jax.random.split(key, 6)

    def linear(kw, kb, fan_in, fan_out):
        bound = 1.0 / math.sqrt(fan_in)
        w = jax.random.uniform(kw, (fan_out, fan_in), jnp.float32, -bound, bound)
        b = jax.random.uniform(kb, (fan_out, 1), jnp.float32, -bound, bound)
        return w, b

    w1, b1 = linear(k[0], k[1], 16, 200)
    w2, b2 = linear(k[2], k[3], 200, 80)
    w3t, b3c = linear(k[4], k[5], 80, 1)   # (1, 80), (1, 1)
    return (w1, b1, w2, b2, w3t.T, b3c.reshape(1))


def reference_forward(x, params):
    w1, b1, w2, b2, w3, b3 = params
    h = jnp.maximum(jnp.dot(x, w1.T, precision="highest") + b1.T, 0.0)
    h = jnp.maximum(jnp.dot(h, w2.T, precision="highest") + b2.T, 0.0)
    return jnp.dot(h, w3, precision="highest") + b3


if __name__ == "__main__":
    key = jax.random.PRNGKey(0)
    k_params, k_x, k_x2 = jax.random.split(key, 3)

    params = init_params(k_params)

    # Same batch size as the torch training loop: single lane-padded tile, 1 grid step.
    B = 32
    x = jax.random.normal(k_x, (B, 16), jnp.float32)
    out = jax.block_until_ready(neural_model_forward(x, params))
    ref = reference_forward(x, params)
    assert out.shape == (B, 1)
    assert jnp.allclose(out, ref, atol=1e-3, rtol=1e-3), "mismatch vs JAX reference (B=32)"

    # Larger / ragged batch: 2 parallel grid steps (both v7x TCs) + clipped tail block.
    B2 = 300
    x2 = jax.random.normal(k_x2, (B2, 16), jnp.float32)
    out2 = jax.block_until_ready(neural_model_forward(x2, params))
    ref2 = reference_forward(x2, params)
    assert out2.shape == (B2, 1)
    assert jnp.allclose(out2, ref2, atol=1e-3, rtol=1e-3), "mismatch vs JAX reference (B=300)"

    # TODO(synk): fit()/loss_fn training loop, Adam optimizer and DataLoader are
    # host-side training utilities, not part of the forward pass, so they are not
    # implemented as kernels.
    print("KERNEL_OK")
</pallas_src>

<mosaic_0001>
module attributes {stable_mosaic.version = 11 : i64} {
  func.func @_mlp_kernel(%arg0: i32, %arg1: memref<128x16xf32, #tpu.memory_space<vmem>>, %arg2: memref<200x16xf32, #tpu.memory_space<vmem>>, %arg3: memref<200x1xf32, #tpu.memory_space<vmem>>, %arg4: memref<80x200xf32, #tpu.memory_space<vmem>>, %arg5: memref<80x1xf32, #tpu.memory_space<vmem>>, %arg6: memref<80x1xf32, #tpu.memory_space<vmem>>, %arg7: memref<1xf32, #tpu.memory_space<smem>>, %arg8: memref<1x128xf32, #tpu.memory_space<vmem>>) attributes {dimension_semantics = [#tpu.dimension_semantics<parallel>], iteration_bounds = array<i64: 1>, scalar_prefetch = 0 : i64, scratch_operands = 0 : i64, tpu.core_type = #tpu.core_type<tc>, window_params = [{transform_indices = @transform_0, window_bounds = array<i64: 128, 16>}, {pipeline_mode = #tpu.pipeline_mode<synchronous>, transform_indices = @transform_1, window_bounds = array<i64: 200, 16>}, {pipeline_mode = #tpu.pipeline_mode<synchronous>, transform_indices = @transform_2, window_bounds = array<i64: 200, 1>}, {pipeline_mode = #tpu.pipeline_mode<synchronous>, transform_indices = @transform_3, window_bounds = array<i64: 80, 200>}, {pipeline_mode = #tpu.pipeline_mode<synchronous>, transform_indices = @transform_4, window_bounds = array<i64: 80, 1>}, {pipeline_mode = #tpu.pipeline_mode<synchronous>, transform_indices = @transform_5, window_bounds = array<i64: 80, 1>}, {transform_indices = @transform_6, window_bounds = array<i64: 1>}, {transform_indices = @transform_7, window_bounds = array<i64: 1, 128>}]} {
    %c0 = arith.constant 0 : index
    %c0_0 = arith.constant 0 : index
    %0 = vector.load %arg2[%c0, %c0_0] : memref<200x16xf32, #tpu.memory_space<vmem>>, vector<200x16xf32>
    %c0_1 = arith.constant 0 : index
    %c0_2 = arith.constant 0 : index
    %1 = vector.load %arg1[%c0_1, %c0_2] : memref<128x16xf32, #tpu.memory_space<vmem>>, vector<128x16xf32>
    %cst = arith.constant dense<0.000000e+00> : vector<200x128xf32>
    %2 = tpu.matmul %0, %1, %cst {dimension_numbers = #tpu.dot_dimension_numbers<[1], [1], [0], [0], [0, 0, 1, 0], [], []>} : vector<200x16xf32>, vector<128x16xf32>, vector<200x128xf32> -> vector<200x128xf32>
    %c0_3 = arith.constant 0 : index
    %c0_4 = arith.constant 0 : index
    %3 = vector.load %arg3[%c0_3, %c0_4] : memref<200x1xf32, #tpu.memory_space<vmem>>, vector<200x1xf32>
    %4 = vector.broadcast %3 : vector<200x1xf32> to vector<200x128xf32>
    %5 = arith.addf %2, %4 : vector<200x128xf32>
    %cst_5 = arith.constant 0.000000e+00 : f32
    %6 = vector.broadcast %cst_5 : f32 to vector<200x128xf32>
    %7 = arith.maximumf %5, %6 : vector<200x128xf32>
    %c0_6 = arith.constant 0 : index
    %c0_7 = arith.constant 0 : index
    %8 = vector.load %arg4[%c0_6, %c0_7] : memref<80x200xf32, #tpu.memory_space<vmem>>, vector<80x200xf32>
    %cst_8 = arith.constant dense<0.000000e+00> : vector<80x128xf32>
    %9 = tpu.matmul %8, %7, %cst_8 {dimension_numbers = #tpu.dot_dimension_numbers<[1], [0], [0], [1], [0, 0, 1, 1], [], []>} : vector<80x200xf32>, vector<200x128xf32>, vector<80x128xf32> -> vector<80x128xf32>
    %c0_9 = arith.constant 0 : index
    %c0_10 = arith.constant 0 : index
    %10 = vector.load %arg5[%c0_9, %c0_10] : memref<80x1xf32, #tpu.memory_space<vmem>>, vector<80x1xf32>
    %11 = vector.broadcast %10 : vector<80x1xf32> to vector<80x128xf32>
    %12 = arith.addf %9, %11 : vector<80x128xf32>
    %cst_11 = arith.constant 0.000000e+00 : f32
    %13 = vector.broadcast %cst_11 : f32 to vector<80x128xf32>
    %14 = arith.maximumf %12, %13 : vector<80x128xf32>
    %c0_12 = arith.constant 0 : index
    %c0_13 = arith.constant 0 : index
    %15 = vector.load %arg6[%c0_12, %c0_13] : memref<80x1xf32, #tpu.memory_space<vmem>>, vector<80x1xf32>
    %16 = vector.broadcast %15 : vector<80x1xf32> to vector<80x128xf32>
    %17 = arith.mulf %14, %16 : vector<80x128xf32>
    %cst_14 = arith.constant dense<0.000000e+00> : vector<128xf32>
    %18 = vector.multi_reduction <add>, %17, %cst_14 [0] : vector<80x128xf32> to vector<128xf32>
    %19 = vector.shape_cast %18 : vector<128xf32> to vector<1x128xf32>
    %c0_15 = arith.constant 0 : index
    %20 = memref.load %arg7[%c0_15] : memref<1xf32, #tpu.memory_space<smem>>
    %21 = vector.broadcast %20 : f32 to vector<1x128xf32>
    %22 = arith.addf %19, %21 : vector<1x128xf32>
    %c0_16 = arith.constant 0 : index
    %c0_17 = arith.constant 0 : index
    %23 = vector.load %arg8[%c0_16, %c0_17] : memref<1x128xf32, #tpu.memory_space<vmem>>, vector<1x128xf32>
    tpu.vector_store %arg8[%c0_16, %c0_17], %22 {strides = array<i32>} : memref<1x128xf32, #tpu.memory_space<vmem>>, vector<1x128xf32>,
    return
  }
  func.func @transform_0(%arg0: i32) -> (i32, i32) {
    %c0_i32 = arith.constant 0 : i32
    %c0_i32_0 = arith.constant 0 : i32
    return %arg0, %c0_i32 : i32, i32
  }
  func.func @transform_1(%arg0: i32) -> (i32, i32) {
    %c0_i32 = arith.constant 0 : i32
    %c0_i32_0 = arith.constant 0 : i32
    %c0_i32_1 = arith.constant 0 : i32
    return %c0_i32, %c0_i32_0 : i32, i32
  }
  func.func @transform_2(%arg0: i32) -> (i32, i32) {
    %c0_i32 = arith.constant 0 : i32
    %c0_i32_0 = arith.constant 0 : i32
    %c0_i32_1 = arith.constant 0 : i32
    return %c0_i32, %c0_i32_0 : i32, i32
  }
  func.func @transform_3(%arg0: i32) -> (i32, i32) {
    %c0_i32 = arith.constant 0 : i32
    %c0_i32_0 = arith.constant 0 : i32
    %c0_i32_1 = arith.constant 0 : i32
    return %c0_i32, %c0_i32_0 : i32, i32
  }
  func.func @transform_4(%arg0: i32) -> (i32, i32) {
    %c0_i32 = arith.constant 0 : i32
    %c0_i32_0 = arith.constant 0 : i32
    %c0_i32_1 = arith.constant 0 : i32
    return %c0_i32, %c0_i32_0 : i32, i32
  }
  func.func @transform_5(%arg0: i32) -> (i32, i32) {
    %c0_i32 = arith.constant 0 : i32
    %c0_i32_0 = arith.constant 0 : i32
    %c0_i32_1 = arith.constant 0 : i32
    return %c0_i32, %c0_i32_0 : i32, i32
  }
  func.func @transform_6(%arg0: i32) -> i32 {
    %c0_i32 = arith.constant 0 : i32
    %c0_i32_0 = arith.constant 0 : i32
    return %c0_i32 : i32
  }
  func.func @transform_7(%arg0: i32) -> (i32, i32) {
    %c0_i32 = arith.constant 0 : i32
    %c0_i32_0 = arith.constant 0 : i32
    return %c0_i32, %arg0 : i32, i32
  }
}

</mosaic_0001>

<bundles_post_ra>
// kernel: neural_model_forward.1
= control target key start
LH: loop header
LB: loop body
LE: loop exit
PB: predicated region body
PF: predicated region fallthrough
CT: control target
= control target key end

     0   :  { %vm218_vm0 = vcmask 130048   ;;  %v863_v1 = vmov 0   ;;  %vm539_vm1 = vcmask 588800   ;;  %s1332_s0 = inlined_call_operand.vmem [shape: f32[32,16], index: 0, kind: input, shape index: {}]   ;;  %s1333_s2 = inlined_call_operand.vmem [shape: f32[200,1], index: 2, kind: input, shape index: {}]   ;;  %s1334_s1 = inlined_call_operand.vmem [shape: f32[200,16], index: 1, kind: input, shape index: {}]   ;;  %s1335_s4 = inlined_call_operand.vmem [shape: f32[80,1], index: 4, kind: input, shape index: {}]   ;;  %s1336_s5 = inlined_call_operand.vmem [shape: f32[80,1], index: 5, kind: input, shape index: {}]   ;;  %s1337_s3 = inlined_call_operand.vmem [shape: f32[80,200], index: 3, kind: input, shape index: {}]   ;;  %s1338_s6 = inlined_call_operand.<no memory space> [shape: f32[1], index: 6, kind: input, shape index: {}]   ;;  %s1339_s7 = inlined_call_operand.vmem [shape: f32[1,128], index: 7, kind: output, shape index: {}]  }
   0x1   :  { %v67_v0 = vld [vmem:[%s1332_s0 + $0x78] sm:$0xff]  ;;  %860 = vset.pattern.permute.xlu0 %v863_v1  ;;  %861 = vset.pattern.permute.xlu1 %v863_v1  ;;  %v81_v3 = vld [vmem:[%s1333_s2 + $0x68] sm:$0xff]  ;;  %v66_v4 = vld [vmem:[%s1332_s0 + $0x70] sm:$0xff] }
   0x2   :  { %v83_v2 = vld [vmem:[%s1333_s2 + $0x78] sm:$0xff]  ;;  %767 = vmatpush.xpose.msk.msra.mxu0 %vm218_vm0, %v67_v0  ;;  %818 = vmatpush.xpose.msk.msra.mxu2 %vm218_vm0, %v67_v0  ;;  %v65_v5 = vld [vmem:[%s1332_s0 + $0x68] sm:$0xff]  ;;  %v82_v7 = vld [vmem:[%s1333_s2 + $0x70] sm:$0xff] }
   0x3   :  { %819 = vmatpush.xpose.msk.msra.mxu3 %vm218_vm0, %v67_v0  ;;  %170 = vperm.xlu0 %860, %v83_v2   ;;  %v79_v6 = vld [vmem:[%s1333_s2 + $0x58] sm:$0xff]  ;;  %v80_v8 = vld [vmem:[%s1333_s2 + $0x60] sm:$0xff]  ;;  %v78_v10 = vld [vmem:[%s1333_s2 + $0x50] sm:$0xff] }
   0x4   :  { %160 = vperm.xlu1 %861, %v81_v3   ;;  %862 = vset.pattern.permute.xlu2 %v863_v1  ;;  %v64_v9 = vld [vmem:[%s1332_s0 + $0x60] sm:$0xff]  ;;  %v63_v11 = vld [vmem:[%s1332_s0 + $0x58] sm:$0xff]  ;;  %v77_v12 = vld [vmem:[%s1333_s2 + $0x48] sm:$0xff] }
   0x5   :  { %150 = vperm.xlu2 %862, %v79_v6   ;;  %v76_v13 = vld [vmem:[%s1333_s2 + $0x40] sm:$0xff]  ;;  %v62_v14 = vld [vmem:[%s1332_s0 + $0x50] sm:$0xff]  ;;  %v75_v15 = vld [vmem:[%s1333_s2 + $0x38] sm:$0xff] }
   0x6   :  { %768 = vmatpush.xpose.msk.msra.mxu0 %vm218_vm0, %v66_v4  ;;  %820 = vmatpush.xpose.msk.msra.mxu2 %vm218_vm0, %v66_v4  ;;  %v61_v16 = vld [vmem:[%s1332_s0 + $0x48] sm:$0xff]  ;;  %v74_v17 = vld [vmem:[%s1333_s2 + $0x30] sm:$0xff]  ;;  %v60_v19 = vld [vmem:[%s1332_s0 + $0x40] sm:$0xff] }
   0x7   :  { %821 = vmatpush.xpose.msk.msra.mxu3 %vm218_vm0, %v66_v4  ;;  %v73_v18 = vld [vmem:[%s1333_s2 + $0x28] sm:$0xff]  ;;  %v72_v20 = vld [vmem:[%s1333_s2 + $0x20] sm:$0xff]  ;;  %v59_v21 = vld [vmem:[%s1332_s0 + $0x38] sm:$0xff] }
   0x8   :  { %v71_v22 = vld [vmem:[%s1333_s2 + $0x18] sm:$0xff]  ;;  %v70_v23 = vld [vmem:[%s1333_s2 + $0x10] sm:$0xff]  ;;  %v69_v25 = vld [vmem:[%s1333_s2 + $0x8] sm:$0xff] }
   0x9   :  { %v58_v24 = vld [vmem:[%s1332_s0 + $0x30] sm:$0xff]  ;;  %v57_v26 = vld [vmem:[%s1332_s0 + $0x28] sm:$0xff]  ;;  %v68_v27 = vld [vmem:[%s1333_s2] sm:$0xff] }
   0xa   :  { %769 = vmatpush.xpose.msk.msra.mxu0 %vm218_vm0, %v65_v5  ;;  %822 = vmatpush.xpose.msk.msra.mxu2 %vm218_vm0, %v65_v5  ;;  %v92_v28 = vld [vmem:[%s1333_s2 + $0xc0] sm:$0xff]  ;;  %v91_v30 = vld [vmem:[%s1333_s2 + $0xb8] sm:$0xff]  ;;  %v90_v32 = vld [vmem:[%s1333_s2 + $0xb0] sm:$0xff] }
   0xb   :  { %823 = vmatpush.xpose.msk.msra.mxu3 %vm218_vm0, %v65_v5  ;;  %165 = vperm.xlu0 %860, %v82_v7   ;;  %v56_v29 = vld [vmem:[%s1332_s0 + $0x20] sm:$0xff]  ;;  %v55_v31 = vld [vmem:[%s1332_s0 + $0x18] sm:$0xff]  ;;  %v89_v33 = vld [vmem:[%s1333_s2 + $0xa8] sm:$0xff] }
   0xc   :  { %155 = vperm.xlu1 %861, %v80_v8   ;;  %v54_v34 = vld [vmem:[%s1332_s0 + $0x10] sm:$0xff]  ;;  %v88_v35 = vld [vmem:[%s1333_s2 + $0xa0] sm:$0xff]  ;;  %v53_v36 = vld [vmem:[%s1332_s0 + $0x8] sm:$0xff] }
   0xd   :  { %145 = vperm.xlu2 %862, %v78_v10   ;;  %v87_v37 = vld [vmem:[%s1333_s2 + $0x98] sm:$0xff]  ;;  %v86_v38 = vld [vmem:[%s1333_s2 + $0x90] sm:$0xff]  ;;  %v52_v39 = vld [vmem:[%s1332_s0] sm:$0xff] }
   0xe   :  { %770 = vmatpush.xpose.msk.msra.mxu0 %vm218_vm0, %v64_v9  ;;  %824 = vmatpush.xpose.msk.msra.mxu2 %vm218_vm0, %v64_v9  ;;  %v85_v40 = vld [vmem:[%s1333_s2 + $0x88] sm:$0xff]  ;;  %v27_v41 = vld [vmem:[%s1334_s1] sm:$0xff]  ;;  %v41_v43 = vld [vmem:[%s1334_s1 + $0x70] sm:$0xff] }
   0xf   :  { %825 = vmatpush.xpose.msk.msra.mxu3 %vm218_vm0, %v64_v9  ;;  %v36_v42 = vld [vmem:[%s1334_s1 + $0x48] sm:$0xff]  ;;  %v84_v44 = vld [vmem:[%s1333_s2 + $0x80] sm:$0xff]  ;;  %v37_v48 = vld [vmem:[%s1334_s1 + $0x50] sm:$0xff] }
  0x10   :  { %v479_v45 = vld [vmem:[%s1335_s4] sm:$0xff]  ;;  %v480_v46 = vld [vmem:[%s1335_s4 + $0x8] sm:$0xff]  ;;  %v42_v49 = vld [vmem:[%s1334_s1 + $0x78] sm:$0xff] }
  0x11   :  { %v28_v47 = vld [vmem:[%s1334_s1 + $0x8] sm:$0xff]  ;;  %v481_v50 = vld [vmem:[%s1335_s4 + $0x10] sm:$0xff]  ;;  %v482_v51 = vld [vmem:[%s1335_s4 + $0x18] sm:$0xff] }
  0x12   :  { %771 = vmatpush.xpose.msk.msra.mxu0 %vm218_vm0, %v63_v11  ;;  %826 = vmatpush.xpose.msk.msra.mxu2 %vm218_vm0, %v63_v11  ;;  %v483_v52 = vld [vmem:[%s1335_s4 + $0x20] sm:$0xff]  ;;  %v29_v53 = vld [vmem:[%s1334_s1 + $0x10] sm:$0xff]  ;;  %v38_v54 = vld [vmem:[%s1334_s1 + $0x58] sm:$0xff] }
  0x13   :  { %827 = vmatpush.xpose.msk.msra.mxu3 %vm218_vm0, %v63_v11  ;;  %140 = vperm.xlu0 %860, %v77_v12   ;;  %v43_v55 = vld [vmem:[%s1334_s1 + $0x80] sm:$0xff]  ;;  %v484_v56 = vld [vmem:[%s1335_s4 + $0x28] sm:$0xff]  ;;  %v485_v57 = vld [vmem:[%s1335_s4 + $0x30] sm:$0xff] }
  0x14   :  { %135 = vperm.xlu1 %861, %v76_v13   ;;  %v486_v58 = vld [vmem:[%s1335_s4 + $0x38] sm:$0xff]  ;;  %v39_v60 = vld [vmem:[%s1334_s1 + $0x60] sm:$0xff]  ;;  %v44_v61 = vld [vmem:[%s1334_s1 + $0x88] sm:$0xff] }
  0x15   :  { %130 = vperm.xlu2 %862, %v75_v15   ;;  %v30_v59 = vld [vmem:[%s1334_s1 + $0x18] sm:$0xff]  ;;  %v674_v62 = vld [vmem:[%s1336_s5] sm:$0xff]  ;;  %v675_v63 = vld [vmem:[%s1336_s5 + $0x8] sm:$0xff] }
  0x16   :  { %772 = vmatpush.xpose.msk.msra.mxu0 %vm218_vm0, %v62_v14  ;;  %828 = vmatpush.xpose.msk.msra.mxu2 %vm218_vm0, %v62_v14  ;;  %v676_v0 = vld [vmem:[%s1336_s5 + $0x10] sm:$0xff]  ;;  %v31_v1 = vld [vmem:[%s1334_s1 + $0x20] sm:$0xff]  ;;  %v40_v2 = vld [vmem:[%s1334_s1 + $0x68] sm:$0xff] }
  0x17   :  { %829 = vmatpush.xpose.msk.msra.mxu3 %vm218_vm0, %v62_v14  ;;  %v45_v3 = vld [vmem:[%s1334_s1 + $0x90] sm:$0xff]  ;;  %v677_v4 = vld [vmem:[%s1336_s5 + $0x18] sm:$0xff]  ;;  %v678_v5 = vld [vmem:[%s1336_s5 + $0x20] sm:$0xff] }
  0x18   :  { %v487_v6 = vld [vmem:[%s1335_s4 + $0x40] sm:$0xff]  ;;  %v32_v7 = vld [vmem:[%s1334_s1 + $0x28] sm:$0xff]  ;;  %v46_v8 = vld [vmem:[%s1334_s1 + $0x98] sm:$0xff] }
  0x19   :  { %v679_v9 = vld [vmem:[%s1336_s5 + $0x28] sm:$0xff]  ;;  %v680_v11 = vld [vmem:[%s1336_s5 + $0x30] sm:$0xff]  ;;  %v47_v13 = vld [vmem:[%s1334_s1 + $0xa0] sm:$0xff] }
  0x1a   :  { %773 = vmatpush.xpose.msk.msra.mxu0 %vm218_vm0, %v61_v16  ;;  %830 = vmatpush.xpose.msk.msra.mxu2 %vm218_vm0, %v61_v16  ;;  %v488_v10 = vld [vmem:[%s1335_s4 + $0x48] sm:$0xff]  ;;  %v33_v12 = vld [vmem:[%s1334_s1 + $0x30] sm:$0xff]  ;;  %v681_v14 = vld [vmem:[%s1336_s5 + $0x38] sm:$0xff] }
  0x1b   :  { %831 = vmatpush.xpose.msk.msra.mxu3 %vm218_vm0, %v61_v16  ;;  %125 = vperm.xlu0 %860, %v74_v17   ;;  %v682_v15 = vld [vmem:[%s1336_s5 + $0x40] sm:$0xff]  ;;  %v683_v16 = vld [vmem:[%s1336_s5 + $0x48] sm:$0xff]  ;;  %v34_v17 = vld [vmem:[%s1334_s1 + $0x38] sm:$0xff] }
  0x1c   :  { %120 = vperm.xlu1 %861, %v73_v18   ;;  %v48_v18 = vld [vmem:[%s1334_s1 + $0xa8] sm:$0xff] }
  0x1d   :  { %115 = vperm.xlu2 %862, %v72_v20   ;;  %v49_v20 = vld [vmem:[%s1334_s1 + $0xb0] sm:$0xff] }
  0x1e   :  { %774 = vmatpush.xpose.msk.msra.mxu0 %vm218_vm0, %v60_v19  ;;  %832 = vmatpush.xpose.msk.msra.mxu2 %vm218_vm0, %v60_v19 }
  0x1f   :  { %833 = vmatpush.xpose.msk.msra.mxu3 %vm218_vm0, %v60_v19  ;;  %v35_v19 = vld [vmem:[%s1334_s1 + $0x40] sm:$0xff] }
  0x22   :  { %775 = vmatpush.xpose.msk.msra.mxu0 %vm218_vm0, %v59_v21  ;;  %834 = vmatpush.xpose.msk.msra.mxu2 %vm218_vm0, %v59_v21 }
  0x23   :  { %835 = vmatpush.xpose.msk.msra.mxu3 %vm218_vm0, %v59_v21  ;;  %110 = vperm.xlu0 %860, %v71_v22   ;;  %v50_v21 = vld [vmem:[%s1334_s1 + $0xb8] sm:$0xff]  ;;  %v51_v22 = vld [vmem:[%s1334_s1 + $0xc0] sm:$0xff] }
  0x24   :  { %105 = vperm.xlu1 %861, %v70_v23  }
  0x25   :  { %100 = vperm.xlu2 %862, %v69_v25  }
  0x26   :  { %776 = vmatpush.xpose.msk.msra.mxu0 %vm218_vm0, %v58_v24  ;;  %836 = vmatpush.xpose.msk.msra.mxu2 %vm218_vm0, %v58_v24 }
  0x27   :  { %837 = vmatpush.xpose.msk.msra.mxu3 %vm218_vm0, %v58_v24 }
  0x2a   :  { %777 = vmatpush.xpose.msk.msra.mxu0 %vm218_vm0, %v57_v26  ;;  %838 = vmatpush.xpose.msk.msra.mxu2 %vm218_vm0, %v57_v26 }
  0x2b   :  { %839 = vmatpush.xpose.msk.msra.mxu3 %vm218_vm0, %v57_v26  ;;  %95 = vperm.xlu0 %860, %v68_v27  }
  0x2c   :  { %215 = vperm.xlu1 %861, %v92_v28  }
  0x2d   :  { %210 = vperm.xlu2 %862, %v91_v30  }
  0x2e   :  { %778 = vmatpush.xpose.msk.msra.mxu0 %vm218_vm0, %v56_v29  ;;  %840 = vmatpush.xpose.msk.msra.mxu2 %vm218_vm0, %v56_v29 }
  0x2f   :  { %841 = vmatpush.xpose.msk.msra.mxu3 %vm218_vm0, %v56_v29 }
  0x32   :  { %779 = vmatpush.xpose.msk.msra.mxu0 %vm218_vm0, %v55_v31  ;;  %842 = vmatpush.xpose.msk.msra.mxu2 %vm218_vm0, %v55_v31 }
  0x33   :  { %843 = vmatpush.xpose.msk.msra.mxu3 %vm218_vm0, %v55_v31  ;;  %205 = vperm.xlu0 %860, %v90_v32  }
  0x34   :  { %200 = vperm.xlu1 %861, %v89_v33  }
  0x35   :  { %195 = vperm.xlu2 %862, %v88_v35  }
  0x36   :  { %780 = vmatpush.xpose.msk.msra.mxu0 %vm218_vm0, %v54_v34  ;;  %844 = vmatpush.xpose.msk.msra.mxu2 %vm218_vm0, %v54_v34 }
  0x37   :  { %845 = vmatpush.xpose.msk.msra.mxu3 %vm218_vm0, %v54_v34 }
  0x3a   :  { %781 = vmatpush.xpose.msk.msra.mxu0 %vm218_vm0, %v53_v36  ;;  %846 = vmatpush.xpose.msk.msra.mxu2 %vm218_vm0, %v53_v36 }
  0x3b   :  { %847 = vmatpush.xpose.msk.msra.mxu3 %vm218_vm0, %v53_v36  ;;  %190 = vperm.xlu0 %860, %v87_v37  }
  0x3c   :  { %185 = vperm.xlu1 %861, %v86_v38  }
  0x3d   :  { %180 = vperm.xlu2 %862, %v85_v40  }
  0x3e   :  { %782 = vmatpush.xpose.msk.msra.mxu0 %vm218_vm0, %v52_v39  ;;  %848 = vmatpush.xpose.msk.msra.mxu2 %vm218_vm0, %v52_v39 }
  0x3f   :  { %849 = vmatpush.xpose.msk.msra.mxu3 %vm218_vm0, %v52_v39 }
  0x41   :  { %783 = vmatmul.msk.f32.vlgmr.msra.gmra.mxu0 %vm218_vm0, %v27_v41  ;;  %792 = vmatmul.msk.f32.vlgmr.msra.gmra.mxu2 %vm218_vm0, %v36_v42 }
  0x42   :  { %797 = vmatmul.msk.f32.vlgmr.msra.gmra.mxu3 %vm218_vm0, %v41_v43 }
  0x43   :  { %175 = vperm.xlu0 %860, %v84_v44  }
  0x44   :  { %491 = vperm.xlu1 %861, %v479_v45  }
  0x45   :  { %496 = vperm.xlu2 %862, %v480_v46  }
  0x49   :  { %784 = vmatmul.msk.f32.gmra.mxu0 %vm218_vm0, %v28_v47  ;;  %793 = vmatmul.msk.f32.gmra.mxu2 %vm218_vm0, %v37_v48 }
  0x4a   :  { %798 = vmatmul.msk.f32.gmra.mxu3 %vm218_vm0, %v42_v49 }
  0x4b   :  { %501 = vperm.xlu0 %860, %v481_v50  }
  0x4c   :  { %506 = vperm.xlu1 %861, %v482_v51  }
  0x4d   :  { %511 = vperm.xlu2 %862, %v483_v52  }
  0x51   :  { %785 = vmatmul.msk.f32.gmra.mxu0 %vm218_vm0, %v29_v53  ;;  %794 = vmatmul.msk.f32.gmra.mxu2 %vm218_vm0, %v38_v54 }
  0x52   :  { %799 = vmatmul.msk.f32.gmra.mxu3 %vm218_vm0, %v43_v55 }
  0x53   :  { %516 = vperm.xlu0 %860, %v484_v56  }
  0x54   :  { %521 = vperm.xlu1 %861, %v485_v57  }
  0x55   :  { %526 = vperm.xlu2 %862, %v486_v58  }
  0x59   :  { %786 = vmatmul.msk.f32.gmra.mxu0 %vm218_vm0, %v30_v59  ;;  %795 = vmatmul.msk.f32.gmra.mxu2 %vm218_vm0, %v39_v60 }
  0x5a   :  { %800 = vmatmul.msk.f32.gmra.mxu3 %vm218_vm0, %v44_v61 }
  0x5b   :  { %686 = vperm.xlu0 %860, %v674_v62  }
  0x5c   :  { %691 = vperm.xlu1 %861, %v675_v63  }
  0x5d   :  { %696 = vperm.xlu2 %862, %v676_v0  }
  0x5f   :  { %v151_v40 = vpop.permute.xlu2 %150 }
  0x61   :  { %787 = vmatmul.msk.f32.gmra.mxu0 %vm218_vm0, %v31_v1  ;;  %796 = vmatmul.msk.f32.gmra.mxu2 %vm218_vm0, %v40_v2 }
  0x62   :  { %801 = vmatmul.msk.f32.gmra.mxu3 %vm218_vm0, %v45_v3 }
  0x63   :  { %701 = vperm.xlu0 %860, %v677_v4  }
  0x64   :  { %706 = vperm.xlu1 %861, %v678_v5  }
  0x65   :  { %531 = vperm.xlu2 %862, %v487_v6  }
  0x67   :  { %v146_v47 = vpop.permute.xlu2 %145 }
  0x69   :  { %788 = vmatmul.msk.f32.gmra.mxu0 %vm218_vm0, %v32_v7 }
  0x6a   :  { %802 = vmatmul.msk.f32.gmra.mxu3 %vm218_vm0, %v46_v8 }
  0x6b   :  { %711 = vperm.xlu0 %860, %v679_v9  }
  0x6c   :  { %536 = vperm.xlu1 %861, %v488_v10  }
  0x6d   :  { %716 = vperm.xlu2 %862, %v680_v11  }
  0x6f   :  { %v131_v62 = vpop.permute.xlu2 %130 }
  0x71   :  { %789 = vmatmul.msk.f32.gmra.mxu0 %vm218_vm0, %v33_v12 }
  0x72   :  { %803 = vmatmul.msk.f32.gmra.mxu3 %vm218_vm0, %v47_v13 }
  0x73   :  { %721 = vperm.xlu0 %860, %v681_v14  }
  0x74   :  { %726 = vperm.xlu1 %861, %v682_v15  }
  0x75   :  { %731 = vperm.xlu2 %862, %v683_v16   ;;  %v171_v24 = vpop.permute.xlu0 %170 }
  0x76   :  { %v161_v39 = vpop.permute.xlu1 %160 }
  0x77   :  { %v116_v4 = vpop.permute.xlu2 %115 }
  0x79   :  { %790 = vmatmul.msk.f32.gmra.mxu0 %vm218_vm0, %v34_v17 }
  0x7a   :  { %804 = vmatmul.msk.f32.gmra.mxu3 %vm218_vm0, %v48_v18 }
  0x7d   :  { %v166_v28 = vpop.permute.xlu0 %165 }
  0x7e   :  { %v156_v44 = vpop.permute.xlu1 %155 }
  0x7f   :  { %v101_v13 = vpop.permute.xlu2 %100 }
  0x81   :  { %791 = vmatmul.msk.f32.gmra.mxu0 %vm218_vm0, %v35_v19 }
  0x82   :  { %805 = vmatmul.msk.f32.gmra.mxu3 %vm218_vm0, %v49_v20 }
  0x85   :  { %v141_v51 = vpop.permute.xlu0 %140 }
  0x86   :  { %v136_v58 = vpop.permute.xlu1 %135 }
  0x8a   :  { %806 = vmatmul.msk.f32.gmra.mxu3 %vm218_vm0, %v50_v21 }
  0x8d   :  { %v126_v0 = vpop.permute.xlu0 %125 }
  0x8e   :  { %v121_v3 = vpop.permute.xlu1 %120 }
  0x92   :  { %807 = vmatmul.msk.f32.gmra.mxu3 %vm218_vm0, %v51_v22 }
  0x95   :  { %v111_v5 = vpop.permute.xlu0 %110 }
  0x96   :  { %v106_v10 = vpop.permute.xlu1 %105 }
  0x9d   :  { %v96_v16 = vpop.permute.xlu0 %95 }
  0xbe   :  { %v1235_v23 = vpop.f32.mrf.mxu0 }
  0xc4   :  { %v386_v25 = vpop.f32.mrf.mxu2 }
  0xc5   :  { %v401_v26 = vpop.f32.mrf.mxu3  ;;  %v387_v56 = vadd.f32 %v386_v25, %v141_v51  ;;  %v216_v25 = vpop.permute.xlu1 %215 }
  0xc6   :  { %v1237_v27 = vpop.f32.mrf.mxu0  ;;  %v402_v29 = vadd.f32 %v401_v26, %v166_v28 }
  0xc7   :  { %v443_v63 = vmax.f32 %v387_v56, 0.0  ;;  %v363_v26 = vadd.f32 %v1237_v27, %v101_v13  ;;  %v464_v13 = vld [vmem:[%s1337_s3 + $0x28] sm:$0xff] }
  0xc8   :  { %v448_v34 = vmax.f32 %v402_v29, 0.0  ;;  %v211_v29 = vpop.permute.xlu2 %210 }
  0xcc   :  { %v389_v30 = vpop.f32.mrf.mxu2 }
  0xcd   :  { %v404_v31 = vpop.f32.mrf.mxu3  ;;  %v390_v55 = vadd.f32 %v389_v30, %v146_v47  ;;  %v360_v30 = vadd.f32 %v1235_v23, %v96_v16  ;;  %v201_v27 = vpop.permute.xlu1 %200  ;;  %v461_v47 = vld [vmem:[%s1337_s3 + $0x10] sm:$0xff] }
  0xce   :  { %v1239_v32 = vpop.f32.mrf.mxu0  ;;  %v405_v33 = vadd.f32 %v404_v31, %v171_v24 }
  0xcf   :  { %v444_v59 = vmax.f32 %v390_v55, 0.0  ;;  %v366_v22 = vadd.f32 %v1239_v32, %v106_v10  ;;  %v459_v32 = vld [vmem:[%s1337_s3] sm:$0xff]  ;;  %v477_v10 = vld [vmem:[%s1337_s3 + $0x90] sm:$0xff] }
  0xd0   :  { %v449_v35 = vmax.f32 %v405_v33, 0.0 }
  0xd1   :  { %v436_v31 = vmax.f32 %v366_v22, 0.0 }
  0xd2   :  { %570 = vmatpush.msra.mxu1 %v449_v35  ;;  %v435_v35 = vmax.f32 %v363_v26, 0.0 }
  0xd4   :  { %571 = vmatpush.msra.mxu1 %v448_v34  ;;  %v392_v36 = vpop.f32.mrf.mxu2  ;;  %v206_v34 = vpop.permute.xlu0 %205 }
  0xd5   :  { %v1241_v37 = vpop.f32.mrf.mxu3  ;;  %v393_v52 = vadd.f32 %v392_v36, %v151_v40  ;;  %v434_v36 = vmax.f32 %v360_v30, 0.0 }
  0xd6   :  { %v368_v38 = vpop.f32.mrf.mxu0 }
  0xd7   :  { %v445_v57 = vmax.f32 %v393_v52, 0.0  ;;  %v369_v20 = vadd.f32 %v368_v38, %v111_v5  ;;  %v471_v5 = vld [vmem:[%s1337_s3 + $0x60] sm:$0xff] }
  0xd9   :  { %v437_v28 = vmax.f32 %v369_v20, 0.0 }
  0xdc   :  { %v395_v41 = vpop.f32.mrf.mxu2 }
  0xdd   :  { %v1243_v42 = vpop.f32.mrf.mxu3  ;;  %v396_v45 = vadd.f32 %v395_v41, %v156_v44  ;;  %v196_v41 = vpop.permute.xlu2 %195 }
  0xde   :  { %v371_v43 = vpop.f32.mrf.mxu0  ;;  %v191_v44 = vpop.permute.xlu0 %190 }
  0xdf   :  { %v446_v53 = vmax.f32 %v396_v45, 0.0  ;;  %v372_v17 = vadd.f32 %v371_v43, %v116_v4  ;;  %v474_v4 = vld [vmem:[%s1337_s3 + $0x78] sm:$0xff] }
  0xe1   :  { %v438_v24 = vmax.f32 %v372_v17, 0.0 }
  0xe4   :  { %v398_v46 = vpop.f32.mrf.mxu2 }
  0xe5   :  { %v399_v48 = vadd.f32 %v398_v46, %v161_v39  ;;  %v1245_v49 = vpop.f32.mrf.mxu3  ;;  %v181_v56 = vpop.permute.xlu2 %180 }
  0xe6   :  { %v374_v50 = vpop.f32.mrf.mxu0 }
  0xe7   :  { %v447_v54 = vmax.f32 %v399_v48, 0.0  ;;  %v375_v14 = vadd.f32 %v374_v50, %v121_v3  ;;  %v469_v3 = vld [vmem:[%s1337_s3 + $0x50] sm:$0xff] }
  0xe9   :  { %572 = vmatpush.msra.mxu1 %v447_v54  ;;  %v439_v21 = vmax.f32 %v375_v14, 0.0  ;;  %v466_v14 = vld [vmem:[%s1337_s3 + $0x38] sm:$0xff] }
  0xeb   :  { %573 = vmatpush.msra.mxu1 %v446_v53  ;;  %v186_v53 = vpop.permute.xlu1 %185 }
  0xec   :  { %v414_v54 = vadd.f32 %v1245_v49, %v186_v53 }
  0xed   :  { %v1247_v60 = vpop.f32.mrf.mxu3  ;;  %574 = vmatpush.msra.mxu1 %v445_v57  ;;  %v411_v57 = vadd.f32 %v1243_v42, %v181_v56  ;;  %v468_v42 = vld [vmem:[%s1337_s3 + $0x48] sm:$0xff] }
  0xee   :  { %v377_v61 = vpop.f32.mrf.mxu0  ;;  %v417_v51 = vadd.f32 %v1247_v60, %v191_v44  ;;  %v176_v60 = vpop.permute.xlu0 %175 }
  0xef   :  { %575 = vmatpush.msra.mxu1 %v444_v59  ;;  %v378_v11 = vadd.f32 %v377_v61, %v126_v0  ;;  %v463_v59 = vld [vmem:[%s1337_s3 + $0x20] sm:$0xff]  ;;  %v408_v61 = vadd.f32 %v1241_v37, %v176_v60  ;;  %v451_v49 = vmax.f32 %v411_v57, 0.0  ;;  %v465_v37 = vld [vmem:[%s1337_s3 + $0x30] sm:$0xff]  ;;  %v470_v0 = vld [vmem:[%s1337_s3 + $0x58] sm:$0xff] }
  0xf1   :  { %576 = vmatpush.msra.mxu1 %v443_v63  ;;  %v440_v18 = vmax.f32 %v378_v11, 0.0  ;;  %v450_v63 = vmax.f32 %v408_v61, 0.0  ;;  %v460_v11 = vld [vmem:[%s1337_s3 + $0x8] sm:$0xff] }
  0xf5   :  { %v419_v1 = vpop.f32.mrf.mxu3 }
  0xf6   :  { %v380_v2 = vpop.f32.mrf.mxu0  ;;  %v420_v48 = vadd.f32 %v419_v1, %v196_v41  ;;  %v467_v1 = vld [vmem:[%s1337_s3 + $0x40] sm:$0xff] }
  0xf7   :  { %v381_v8 = vadd.f32 %v380_v2, %v131_v62  ;;  %v452_v62 = vmax.f32 %v414_v54, 0.0  ;;  %v472_v2 = vld [vmem:[%s1337_s3 + $0x68] sm:$0xff] }
  0xf8   :  { %v454_v55 = vmax.f32 %v420_v48, 0.0 }
  0xf9   :  { %v441_v15 = vmax.f32 %v381_v8, 0.0  ;;  %v478_v8 = vld [vmem:[%s1337_s3 + $0x98] sm:$0xff] }
  0xfd   :  { %v422_v6 = vpop.f32.mrf.mxu3 }
  0xfe   :  { %v383_v7 = vpop.f32.mrf.mxu0  ;;  %v423_v45 = vadd.f32 %v422_v6, %v201_v27  ;;  %v476_v6 = vld [vmem:[%s1337_s3 + $0x88] sm:$0xff] }
  0xff   :  { %v384_v9 = vadd.f32 %v383_v7, %v136_v58  ;;  %v453_v58 = vmax.f32 %v417_v51, 0.0  ;;  %v473_v7 = vld [vmem:[%s1337_s3 + $0x70] sm:$0xff] }
 0x100   :  { %v455_v52 = vmax.f32 %v423_v45, 0.0 }
 0x101   :  { %v442_v12 = vmax.f32 %v384_v9, 0.0  ;;  %v475_v9 = vld [vmem:[%s1337_s3 + $0x80] sm:$0xff] }
 0x103   :  { %577 = vmatpush.msra.mxu1 %v442_v12  ;;  %v462_v12 = vld [vmem:[%s1337_s3 + $0x18] sm:$0xff] }
 0x105   :  { %v425_v19 = vpop.f32.mrf.mxu3  ;;  %578 = vmatpush.msra.mxu1 %v441_v15 }
 0x106   :  { %v426_v23 = vadd.f32 %v425_v19, %v206_v34 }
 0x107   :  { %579 = vmatpush.msra.mxu1 %v440_v18 }
 0x108   :  { %v456_v50 = vmax.f32 %v426_v23, 0.0 }
 0x109   :  { %580 = vmatpush.msra.mxu1 %v439_v21 }
 0x10b   :  { %581 = vmatpush.msra.mxu1 %v438_v24  ;;  %v492_v24 = vpop.permute.xlu1 %491 }
 0x10d   :  { %v428_v33 = vpop.f32.mrf.mxu3  ;;  %582 = vmatpush.msra.mxu1 %v437_v28 }
 0x10e   :  { %v429_v39 = vadd.f32 %v428_v33, %v211_v29  ;;  %v502_v29 = vpop.permute.xlu0 %501 }
 0x10f   :  { %583 = vmatpush.msra.mxu1 %v436_v31 }
 0x110   :  { %v457_v46 = vmax.f32 %v429_v39, 0.0 }
 0x111   :  { %584 = vmatpush.msra.mxu1 %v435_v35 }
 0x113   :  { %585 = vmatpush.msra.mxu1 %v434_v36  ;;  %v507_v30 = vpop.permute.xlu1 %506 }
 0x114   :  { %586 = vmatmul.f32.vlgmr.msra.gmra.mxu1 %v459_v32 }
 0x115   :  { %v431_v38 = vpop.f32.mrf.mxu3 }
 0x116   :  { %v432_v40 = vadd.f32 %v431_v38, %v216_v25  ;;  %v497_v25 = vpop.permute.xlu2 %496  ;;  %v517_v35 = vpop.permute.xlu0 %516 }
 0x118   :  { %v458_v43 = vmax.f32 %v432_v40, 0.0 }
 0x11a   :  { %624 = vmatpush.msrb.mxu1 %v458_v43  ;;  %850 = vmatpush.msrb.mxu2 %v458_v43 }
 0x11b   :  { %v522_v36 = vpop.permute.xlu1 %521 }
 0x11c   :  { %625 = vmatpush.msrb.mxu1 %v457_v46  ;;  %851 = vmatpush.msrb.mxu2 %v457_v46 }
 0x11d   :  { %589 = vmatmul.f32.gmra.mxu1 %v461_v47 }
 0x11e   :  { %626 = vmatpush.msrb.mxu1 %v456_v50  ;;  %852 = vmatpush.msrb.mxu2 %v456_v50  ;;  %v512_v31 = vpop.permute.xlu2 %511  ;;  %v687_v41 = vpop.permute.xlu0 %686 }
 0x120   :  { %627 = vmatpush.msrb.mxu1 %v455_v52  ;;  %853 = vmatpush.msrb.mxu2 %v455_v52 }
 0x122   :  { %628 = vmatpush.msrb.mxu1 %v454_v55  ;;  %854 = vmatpush.msrb.mxu2 %v454_v55 }
 0x123   :  { %v692_v43 = vpop.permute.xlu1 %691 }
 0x124   :  { %629 = vmatpush.msrb.mxu1 %v453_v58  ;;  %855 = vmatpush.msrb.mxu2 %v453_v58 }
 0x125   :  { %592 = vmatmul.f32.gmra.mxu1 %v463_v59 }
 0x126   :  { %630 = vmatpush.msrb.mxu1 %v452_v62  ;;  %856 = vmatpush.msrb.mxu2 %v452_v62  ;;  %v527_v32 = vpop.permute.xlu2 %526  ;;  %v702_v55 = vpop.permute.xlu0 %701 }
 0x128   :  { %631 = vmatpush.msrb.mxu1 %v451_v49  ;;  %857 = vmatpush.msrb.mxu2 %v451_v49 }
 0x12a   :  { %632 = vmatpush.msrb.mxu1 %v450_v63  ;;  %858 = vmatpush.msrb.mxu2 %v450_v63 }
 0x12b   :  { %812 = vmatmul.msk.f32.vlgmr.msrb.gmra.mxu2 %vm539_vm1, %v468_v42  ;;  %v707_v58 = vpop.permute.xlu1 %706 }
 0x12d   :  { %595 = vmatmul.f32.gmra.mxu1 %v465_v37 }
 0x12e   :  { %v697_v47 = vpop.permute.xlu2 %696 }
 0x133   :  { %813 = vmatmul.msk.f32.gmra.mxu2 %vm539_vm1, %v470_v0 }
 0x135   :  { %598 = vmatmul.f32.gmra.mxu1 %v467_v1 }
 0x136   :  { %v532_v61 = vpop.permute.xlu2 %531 }
 0x13b   :  { %814 = vmatmul.msk.f32.gmra.mxu2 %vm539_vm1, %v472_v2 }
 0x13d   :  { %601 = vmatmul.f32.gmra.mxu1 %v469_v3 }
 0x143   :  { %815 = vmatmul.msk.f32.gmra.mxu2 %vm539_vm1, %v474_v4 }
 0x145   :  { %604 = vmatmul.f32.gmra.mxu1 %v471_v5 }
 0x14b   :  { %816 = vmatmul.msk.f32.gmra.mxu2 %vm539_vm1, %v476_v6  ;;  %v712_v6 = vpop.permute.xlu0 %711 }
 0x14d   :  { %607 = vmatmul.f32.gmra.mxu1 %v473_v7 }
 0x153   :  { %817 = vmatmul.msk.f32.gmra.mxu2 %vm539_vm1, %v478_v8 }
 0x155   :  { %610 = vmatmul.f32.gmra.mxu1 %v475_v9 }
 0x15d   :  { %613 = vmatmul.f32.gmra.mxu1 %v477_v10 }
 0x165   :  { %808 = vmatmul.msk.f32.vlgmr.msrb.gmra.mxu1 %vm539_vm1, %v460_v11  ;;  %v537_v11 = vpop.permute.xlu1 %536 }
 0x16d   :  { %809 = vmatmul.msk.f32.gmra.mxu1 %vm539_vm1, %v462_v12 }
 0x175   :  { %810 = vmatmul.msk.f32.gmra.mxu1 %vm539_vm1, %v464_v13 }
 0x17d   :  { %811 = vmatmul.msk.f32.gmra.mxu1 %vm539_vm1, %v466_v14 }
 0x191   :  { %v587_v15 = vpop.f32.mrf.mxu1 }
 0x192   :  { %v588_v39 = vadd.f32 %v587_v15, %v492_v24 }
 0x19a   :  { %v590_v16 = vpop.f32.mrf.mxu1 }
 0x19b   :  { %v591_v23 = vadd.f32 %v590_v16, %v497_v25  ;;  %v717_v16 = vpop.permute.xlu2 %716 }
 0x1a2   :  { %v593_v17 = vpop.f32.mrf.mxu1 }
 0x1a3   :  { %v594_v53 = vadd.f32 %v593_v17, %v502_v29 }
 0x1aa   :  { %v596_v18 = vpop.f32.mrf.mxu1 }
 0x1ab   :  { %v597_v42 = vadd.f32 %v596_v18, %v507_v30 }
 0x1ae   :  { %v646_v26 = vpop.f32.mrf.mxu2 }
 0x1b2   :  { %v599_v19 = vpop.f32.mrf.mxu1 }
 0x1b3   :  { %v600_v59 = vadd.f32 %v599_v19, %v512_v31 }
 0x1b5   :  { %v647_v37 = vadd.f32 %v646_v26, %v600_v59 }
 0x1b6   :  { %v649_v33 = vpop.f32.mrf.mxu2 }
 0x1b7   :  { %v668_v7 = vmax.f32 %v647_v37, 0.0 }
 0x1b9   :  { %v738_v18 = vmul.f32 %v707_v58, %v668_v7 }
 0x1ba   :  { %v602_v20 = vpop.f32.mrf.mxu1 }
 0x1bb   :  { %v603_v49 = vadd.f32 %v602_v20, %v517_v35 }
 0x1bd   :  { %v650_v3 = vadd.f32 %v649_v33, %v603_v49 }
 0x1be   :  { %v652_v27 = vpop.f32.mrf.mxu2 }
 0x1bf   :  { %v669_v12 = vmax.f32 %v650_v3, 0.0 }
 0x1c1   :  { %v739_v24 = vmul.f32 %v712_v6, %v669_v12 }
 0x1c2   :  { %v605_v21 = vpop.f32.mrf.mxu1 }
 0x1c3   :  { %v606_v0 = vadd.f32 %v605_v21, %v522_v36 }
 0x1c5   :  { %v653_v8 = vadd.f32 %v652_v27, %v606_v0 }
 0x1c6   :  { %v655_v48 = vpop.f32.mrf.mxu2 }
 0x1c7   :  { %v670_v19 = vmax.f32 %v653_v8, 0.0 }
 0x1c9   :  { %v740_v29 = vmul.f32 %v717_v16, %v670_v19 }
 0x1ca   :  { %v608_v22 = vpop.f32.mrf.mxu1 }
 0x1cb   :  { %v609_v4 = vadd.f32 %v608_v22, %v527_v32  ;;  %v727_v32 = vpop.permute.xlu1 %726 }
 0x1cd   :  { %v656_v13 = vadd.f32 %v655_v48, %v609_v4 }
 0x1ce   :  { %v658_v62 = vpop.f32.mrf.mxu2 }
 0x1cf   :  { %v671_v25 = vmax.f32 %v656_v13, 0.0 }
 0x1d2   :  { %v611_v28 = vpop.f32.mrf.mxu1 }
 0x1d3   :  { %v612_v9 = vadd.f32 %v611_v28, %v532_v61  ;;  %v722_v28 = vpop.permute.xlu0 %721 }
 0x1d4   :  { %v741_v33 = vmul.f32 %v722_v28, %v671_v25 }
 0x1d5   :  { %v659_v20 = vadd.f32 %v658_v62, %v612_v9 }
 0x1d6   :  { %v661_v17 = vpop.f32.mrf.mxu2 }
 0x1d7   :  { %v672_v30 = vmax.f32 %v659_v20, 0.0 }
 0x1da   :  { %v614_v34 = vpop.f32.mrf.mxu1 }
 0x1db   :  { %v615_v14 = vadd.f32 %v614_v34, %v537_v11  ;;  %v742_v34 = vmul.f32 %v727_v32, %v672_v30 }
 0x1dd   :  { %v662_v22 = vadd.f32 %v661_v17, %v615_v14 }
 0x1df   :  { %v673_v35 = vmax.f32 %v662_v22, 0.0 }
 0x1e2   :  { %v634_v38 = vpop.f32.mrf.mxu1 }
 0x1e3   :  { %v635_v40 = vadd.f32 %v634_v38, %v588_v39  ;;  %v732_v38 = vpop.permute.xlu2 %731 }
 0x1e4   :  { %v743_v39 = vmul.f32 %v732_v38, %v673_v35 }
 0x1e5   :  { %v664_v45 = vmax.f32 %v635_v40, 0.0 }
 0x1e7   :  { %v734_v51 = vmul.f32 %v687_v41, %v664_v45 }
 0x1ea   :  { %v637_v44 = vpop.f32.mrf.mxu1 }
 0x1eb   :  { %v638_v46 = vadd.f32 %v637_v44, %v591_v23 }
 0x1ed   :  { %v665_v50 = vmax.f32 %v638_v46, 0.0 }
 0x1ef   :  { %v735_v52 = vmul.f32 %v692_v43, %v665_v50 }
 0x1f1   :  { %v744_v54 = vadd.f32 %v735_v52, %v734_v51 }
 0x1f2   :  { %v640_v56 = vpop.f32.mrf.mxu1 }
 0x1f3   :  { %v641_v57 = vadd.f32 %v640_v56, %v594_v53 }
 0x1f5   :  { %v666_v60 = vmax.f32 %v641_v57, 0.0 }
 0x1f7   :  { %v736_v63 = vmul.f32 %v697_v47, %v666_v60  ;;  %v760_v47 = vstv %s1338_s6 }
 0x1f9   :  { %v745_v1 = vadd.f32 %v744_v54, %v736_v63 }
 0x1fa   :  { %v643_v2 = vpop.f32.mrf.mxu1 }
 0x1fb   :  { %v644_v5 = vadd.f32 %v643_v2, %v597_v42 }
 0x1fd   :  { %v667_v10 = vmax.f32 %v644_v5, 0.0 }
 0x1ff   :  { %v737_v15 = vmul.f32 %v702_v55, %v667_v10 }
 0x201   :  { %v746_v21 = vadd.f32 %v745_v1, %v737_v15 }
 0x203   :  { %v747_v26 = vadd.f32 %v746_v21, %v738_v18 }
 0x205   :  { %v748_v31 = vadd.f32 %v747_v26, %v739_v24 }
 0x207   :  { %v749_v36 = vadd.f32 %v748_v31, %v740_v29 }
 0x209   :  { %v750_v27 = vadd.f32 %v749_v36, %v741_v33 }
 0x20b   :  { %v751_v40 = vadd.f32 %v750_v27, %v742_v34 }
 0x20d   :  { %v752_v41 = vadd.f32 %v751_v40, %v743_v39 }
 0x20f   :  { %v753_v23 = vrot.slane %v752_v41, 4 }
 0x211   :  { %v754_v43 = vadd.f32 %v753_v23, %v752_v41 }
 0x213   :  { %v755_v44 = vrot.slane %v754_v43, 2 }
 0x215   :  { %v756_v45 = vadd.f32 %v755_v44, %v754_v43 }
 0x217   :  { %v757_v46 = vrot.slane %v756_v45, 1 }
 0x219   :  { %v758_v48 = vadd.f32 %v757_v46, %v756_v45 }
 0x21b   :  { %v761_v50 = vadd.f32 %v760_v47, %v758_v48 }
 0x21d   :  { %762 = vst [vmem:[%s1339_s7] sm:$0x1] %v761_v50 }

</bundles_post_ra>
